<compile_context>
chip_gen: v6e
topology: v6e:2x2x1
jax: 0.10.0
libtpu: 0.0.40
codegen_flags: <defaults>
</compile_context>

<pallas_src>
import functools

import jax
import jax.numpy as jnp
from jax.experimental import pallas as pl
from jax.experimental.pallas import tpu as pltpu

_LANE = 128
_SUBLANE = 8
_NEG_BIG = -1e30   # "minus infinity" without inf-arithmetic edge cases
_TB_CAP = 2048     # rows per batch tile (f32 double-buffered ~2.5 MiB VMEM)


def _round_up(x, m):
    return ((x + m - 1) // m) * m


def _action_kernel(h_ref, w_ref, b_ref, o_ref):
    # h_ref: (TB, D_in)        -- native dtype (f32 or bf16)
    # w_ref: (D_in, D_out_pad) -- native dtype, class axis zero-padded to 128
    # b_ref: (1, D_out_pad)    -- f32, padded lanes hold -1e30
    # o_ref: (TB, D_out) or (TB, D_out_pad)
    # MXU matmul with f32 accumulator; bias add and softmax math stay f32.
    logits = jnp.dot(h_ref[...], w_ref[...],
                     preferred_element_type=jnp.float32) + b_ref[...]
    m = jnp.max(logits, axis=-1, keepdims=True)
    shifted = logits - m
    lse = jnp.log(jnp.sum(jnp.exp(shifted), axis=-1, keepdims=True))
    logp = shifted - lse
    # Slice to the output's class width (no-op when emitting the padded layout).
    o_ref[...] = logp[:, : o_ref.shape[-1]].astype(o_ref.dtype)


def prepare_action_params(weight, bias):
    """One-time parameter prep (hoisted out of the per-call forward path).

    weight: (D_out, D_in) PyTorch convention; bias: (D_out,).
    Returns:
      w_pad: (D_in, D_out_pad) — transposed, class columns zero-padded to 128.
      b_pad: (1, D_out_pad) f32 — padded columns set to -1e30 so they never
             contribute to the softmax normalizer.  Must stay f32.
    """
    D_out, D_in = weight.shape
    D_out_pad = _round_up(D_out, _LANE)
    w_pad = jnp.zeros((D_in, D_out_pad), dtype=weight.dtype)
    w_pad = w_pad.at[:, :D_out].set(weight.T)
    b_pad = jnp.full((1, D_out_pad), _NEG_BIG, dtype=jnp.float32)
    b_pad = b_pad.at[0, :D_out].set(bias.astype(jnp.float32))
    return w_pad, b_pad


@functools.partial(
    jax.jit,
    static_argnames=("d_out", "min_pallas_batch", "out_dtype",
                     "lane_padded_output"),
)
def action_network_forward(h_t, w_pad, b_pad, *, d_out,
                           min_pallas_batch=0,
                           out_dtype=None,
                           lane_padded_output=False):
    """a_t = log_softmax(h_t @ W^T + b, axis=1).

    h_t: (B, D_in); w_pad/b_pad from prepare_action_params.
    Returns (B, d_out) (or (B, 128) if lane_padded_output=True) in
    `out_dtype` (default: h_t.dtype).
    """
    B, D_in = h_t.shape
    D_out_pad = w_pad.shape[1]
    out_dtype = h_t.dtype if out_dtype is None else out_dtype

    # Tiny batches: plain XLA fuses matmul + log_softmax; skip kernel launch.
    if B < min_pallas_batch:
        logits = jnp.dot(h_t, w_pad[:, :d_out],
                         preferred_element_type=jnp.float32) + b_pad[0, :d_out]
        return jax.nn.log_softmax(logits, axis=1).astype(out_dtype)

    # Batch tiling: sublane-aligned, >= 2 grid steps whenever B >= 16 so the
    # "parallel" axis actually uses both v7x TensorCores; capped at _TB_CAP
    # to amortize per-step overhead without blowing scoped VMEM on v5e.
    TB = min(_TB_CAP, max(_SUBLANE, _round_up(pl.cdiv(B, 2), _SUBLANE)))
    grid = (pl.cdiv(B, TB),)  # ragged last block handled (masked) by Pallas

    n_out = D_out_pad if lane_padded_output else d_out
    out = pl.pallas_call(
        _action_kernel,
        out_shape=jax.ShapeDtypeStruct((B, n_out), out_dtype),
        grid=grid,
        in_specs=[
            pl.BlockSpec((TB, D_in), lambda i: (i, 0)),          # batch-tiled h
            pl.BlockSpec((D_in, D_out_pad), lambda i: (0, 0)),   # resident W^T
            pl.BlockSpec((1, D_out_pad), lambda i: (0, 0)),      # resident bias
        ],
        out_specs=pl.BlockSpec((TB, n_out), lambda i: (i, 0)),
        compiler_params=pltpu.CompilerParams(
            dimension_semantics=("parallel",),  # shard batch tiles across TCs
        ),
    )(h_t, w_pad, b_pad)
    return out


def _reference(h_t, weight, bias):
    logits = h_t @ weight.T + bias
    return jax.nn.log_softmax(logits, axis=1)


if __name__ == "__main__":
    # Shapes consistent with the module: hidden=32, classes=10.
    D_in, D_out = 32, 10

    key = jax.random.PRNGKey(0)
    k_h, k_w, k_b, k_h2 = jax.random.split(key, 4)

    # Deterministic PyTorch-style init (uniform, bound 1/sqrt(fan_in)).
    bound = 1.0 / (D_in ** 0.5)
    weight = jax.random.uniform(k_w, (D_out, D_in), jnp.float32, -bound, bound)
    bias = jax.random.uniform(k_b, (D_out,), jnp.float32, -bound, bound)

    # One-time parameter prep (not on the per-call path).
    w_pad, b_pad = prepare_action_params(weight, bias)

    # 1) Module-typical tiny batch (single-tile grid).
    B = 8
    h_t = jax.random.normal(k_h, (B, D_in), jnp.float32)
    a_t = action_network_forward(h_t, w_pad, b_pad, d_out=D_out)
    jax.block_until_ready(a_t)
    ref = _reference(h_t, weight, bias)
    assert a_t.shape == (B, D_out)
    assert jnp.allclose(a_t, ref, atol=1e-5, rtol=1e-5), "mismatch (B=8)"

    # 2) Larger, non-tile-divisible batch: 2-step parallel grid + ragged last
    #    block, no host-side padding or post-kernel slicing.
    B2 = 520
    h2 = jax.random.normal(k_h2, (B2, D_in), jnp.float32)
    a2 = action_network_forward(h2, w_pad, b_pad, d_out=D_out)
    jax.block_until_ready(a2)
    ref2 = _reference(h2, weight, bias)
    assert a2.shape == (B2, D_out)
    assert jnp.allclose(a2, ref2, atol=1e-5, rtol=1e-5), "mismatch (B=520)"

    print("KERNEL_OK")
</pallas_src>

<mosaic_0001>
module attributes {stable_mosaic.version = 11 : i64} {
  func.func @_action_kernel(%arg0: i32, %arg1: memref<8x32xf32, #tpu.memory_space<vmem>>, %arg2: memref<32x128xf32, #tpu.memory_space<vmem>>, %arg3: memref<1x128xf32, #tpu.memory_space<vmem>>, %arg4: memref<8x10xf32, #tpu.memory_space<vmem>>) attributes {dimension_semantics = [#tpu.dimension_semantics<parallel>], iteration_bounds = array<i64: 1>, scalar_prefetch = 0 : i64, scratch_operands = 0 : i64, tpu.core_type = #tpu.core_type<tc>, window_params = [{transform_indices = @transform_0, window_bounds = array<i64: 8, 32>}, {pipeline_mode = #tpu.pipeline_mode<synchronous>, transform_indices = @transform_1, window_bounds = array<i64: 32, 128>}, {pipeline_mode = #tpu.pipeline_mode<synchronous>, transform_indices = @transform_2, window_bounds = array<i64: 1, 128>}, {transform_indices = @transform_3, window_bounds = array<i64: 8, 10>}]} {
    %c0 = arith.constant 0 : index
    %c0_0 = arith.constant 0 : index
    %0 = vector.load %arg1[%c0, %c0_0] : memref<8x32xf32, #tpu.memory_space<vmem>>, vector<8x32xf32>
    %c0_1 = arith.constant 0 : index
    %c0_2 = arith.constant 0 : index
    %1 = vector.load %arg2[%c0_1, %c0_2] : memref<32x128xf32, #tpu.memory_space<vmem>>, vector<32x128xf32>
    %cst = arith.constant dense<0.000000e+00> : vector<8x128xf32>
    %2 = tpu.matmul %0, %1, %cst {dimension_numbers = #tpu.dot_dimension_numbers<[1], [0], [0], [1], [0, 0, 1, 1], [], []>} : vector<8x32xf32>, vector<32x128xf32>, vector<8x128xf32> -> vector<8x128xf32>
    %c0_3 = arith.constant 0 : index
    %c0_4 = arith.constant 0 : index
    %3 = vector.load %arg3[%c0_3, %c0_4] : memref<1x128xf32, #tpu.memory_space<vmem>>, vector<1x128xf32>
    %4 = vector.broadcast %3 : vector<1x128xf32> to vector<8x128xf32>
    %5 = arith.addf %2, %4 : vector<8x128xf32>
    %cst_5 = arith.constant dense<0xFF800000> : vector<8xf32>
    %6 = vector.multi_reduction <maximumf>, %5, %cst_5 [1] : vector<8x128xf32> to vector<8xf32>
    %7 = vector.shape_cast %6 : vector<8xf32> to vector<8x1xf32>
    %8 = vector.broadcast %7 : vector<8x1xf32> to vector<8x128xf32>
    %9 = arith.subf %5, %8 : vector<8x128xf32>
    %10 = math.exp %9 : vector<8x128xf32>
    %cst_6 = arith.constant dense<0.000000e+00> : vector<8xf32>
    %11 = vector.multi_reduction <add>, %10, %cst_6 [1] : vector<8x128xf32> to vector<8xf32>
    %12 = vector.shape_cast %11 : vector<8xf32> to vector<8x1xf32>
    %13 = math.log %12 : vector<8x1xf32>
    %14 = vector.broadcast %13 : vector<8x1xf32> to vector<8x128xf32>
    %15 = arith.subf %9, %14 : vector<8x128xf32>
    %16 = vector.extract_strided_slice %15 {offsets = [0, 0], sizes = [8, 10], strides = [1, 1]} : vector<8x128xf32> to vector<8x10xf32>
    %c0_7 = arith.constant 0 : index
    %c0_8 = arith.constant 0 : index
    %17 = vector.load %arg4[%c0_7, %c0_8] : memref<8x10xf32, #tpu.memory_space<vmem>>, vector<8x10xf32>
    tpu.vector_store %arg4[%c0_7, %c0_8], %16 {strides = array<i32>} : memref<8x10xf32, #tpu.memory_space<vmem>>, vector<8x10xf32>,
    return
  }
  func.func @transform_0(%arg0: i32) -> (i32, i32) {
    %c0_i32 = arith.constant 0 : i32
    %c0_i32_0 = arith.constant 0 : i32
    return %arg0, %c0_i32 : i32, i32
  }
  func.func @transform_1(%arg0: i32) -> (i32, i32) {
    %c0_i32 = arith.constant 0 : i32
    %c0_i32_0 = arith.constant 0 : i32
    %c0_i32_1 = arith.constant 0 : i32
    return %c0_i32, %c0_i32_0 : i32, i32
  }
  func.func @transform_2(%arg0: i32) -> (i32, i32) {
    %c0_i32 = arith.constant 0 : i32
    %c0_i32_0 = arith.constant 0 : i32
    %c0_i32_1 = arith.constant 0 : i32
    return %c0_i32, %c0_i32_0 : i32, i32
  }
  func.func @transform_3(%arg0: i32) -> (i32, i32) {
    %c0_i32 = arith.constant 0 : i32
    %c0_i32_0 = arith.constant 0 : i32
    return %arg0, %c0_i32 : i32, i32
  }
}

</mosaic_0001>

<bundles_post_ra>
// kernel: action_network_forward.1
= control target key start
LH: loop header
LB: loop body
LE: loop exit
PB: predicated region body
PF: predicated region fallthrough
CT: control target
= control target key end

     0   :  { %8 = vsyncpa [#allocation3], 0  ;;  %s289_s0 = inlined_call_operand.hbm [shape: f32[8,32], index: 0, kind: input, shape index: {}]   ;;  %s290_s1 = inlined_call_operand.hbm [shape: f32[32,128], index: 1, kind: input, shape index: {}]   ;;  %s291_s2 = inlined_call_operand.vmem [shape: f32[1,128], index: 2, kind: input, shape index: {}]   ;;  %s292_s3 = inlined_call_operand.hbm [shape: f32[8,10], index: 3, kind: output, shape index: {}]  }
   0x1   :  { %9 = vsyncpa [#allocation6], 0 }
   0x2   :  { %10 = vsyncpa [#allocation4], 0  ;;  %s250_s12 = smov [#allocation2]   ;;  %s251_s14 = smov [#allocation5]  }
   0x3   :  { %s17_s13 = sshll.u32 %s250_s12, 4  ;;  %s26_s15 = sshll.u32 %s251_s14, 4  ;;  %s18_s13 = int_to_ptr.vmem [resolvable:$true] %s17_s13  ;;  %s27_s15 = int_to_ptr.vmem [resolvable:$true] %s26_s15 }
   0x4   :  { %s192_s16 = scalar_lea.vmem %s18_s13, 128  ;;  %p197_p1 = scmp.lt.s32.totalorder %s18_s13, %s18_s13 }
   0x5   :  { %p193_p0 = scmp.ne.s32.totalorder %s18_s13, %s192_s16  ;;  %p198_p2 = scmp.lt.s32.totalorder %s192_s16, %s192_s16 }
   0x7   :  { %p199_p3 = por %p198_p2, %p197_p1 }
   0x9   :  { %p200_p4 = pnand %p199_p3, %p193_p0 }
   0xb   :  { %203 = shalt.err (!%p200_p4)
}
   0xc   :  { %20 = dma.hbm_to_vmem [thread:$0]  %s289_s0, 128, %s18_s13, [#allocation3]  }
   0xd   :  { %s212_s19 = scalar_lea.vmem %s27_s15, 512  ;;  %p217_p6 = scmp.lt.s32.totalorder %s27_s15, %s27_s15 }
   0xe   :  { %p213_p5 = scmp.ne.s32.totalorder %s27_s15, %s212_s19  ;;  %p218_p7 = scmp.lt.s32.totalorder %s212_s19, %s212_s19 }
  0x10   :  { %p219_p8 = por %p218_p7, %p217_p6 }
  0x12   :  { %p220_p9 = pnand %p219_p8, %p213_p5 }
  0x14   :  { %223 = shalt.err (!%p220_p9)
}
  0x15   :  { %s252_s20 = smov 128   ;;  %s253_s21 = smov 8  }
  0x16   :  { %32 = dma.hbm_to_vmem [thread:$0]  %s290_s1, 512, %s27_s15, [#allocation6], %s252_s20, %s252_s20, %s253_s21  }
  0x17   :  { %244 = dma.done.wait [#allocation3], 128  }
  0x18   :  { %245 = vsyncadd [#allocation3], 4294967168 }
  0x19   :  { %246 = dma.done.wait [#allocation6], 512  }
  0x1a   :  { %247 = vsyncadd [#allocation6], 4294966784  ;;  %v254_v0 = vmov 0.0   ;;  %vm255_vm0 = vmmov 0   ;;  %v45_v1 = vld [vmem:[#allocation5 + $0x18] sm:$0xff]  ;;  %v44_v2 = vld [vmem:[#allocation5 + $0x10] sm:$0xff] }
  0x1b   :  { %162 = vmatprep.subr.mxu0 %v254_v0  ;;  %170 = vmatprep.mubr.msk.f32.mxu0 %vm255_vm0, %v254_v0  ;;  %v43_v3 = vld [vmem:[#allocation5 + $0x8] sm:$0xff]  ;;  %v42_v4 = vld [vmem:[#allocation5] sm:$0xff]  ;;  %v41_v5 = vld [vmem:[#allocation2] sm:$0xff]  ;;  %vm53_vm1 = vcmask 261120   ;;  %s256_s24 = smov [#allocation7]   ;;  %vm137_vm2 = vcmask 80896  }
  0x1c   :  { %163 = vmatpush3.msra.mxu0 %v45_v1  ;;  %v155_v6 = vld [vmem:[%s291_s2] ss:$0 sm:$0xff]  ;;  %s145_s25 = sshll.u32 %s256_s24, 4  ;;  %s146_s25 = int_to_ptr.vmem [resolvable:$true] %s145_s25 }
  0x1d   :  { %164 = vmatprep.subr.mxu0 %v254_v0  ;;  %s224_s2 = scalar_lea.vmem %s146_s25, 128  ;;  %p229_p11 = scmp.lt.s32.totalorder %s146_s25, %s146_s25 }
  0x1e   :  { %165 = vmatpush3.msra.mxu0 %v44_v2  ;;  %p225_p10 = scmp.ne.s32.totalorder %s146_s25, %s224_s2  ;;  %p230_p12 = scmp.lt.s32.totalorder %s224_s2, %s224_s2 }
  0x1f   :  { %166 = vmatprep.subr.mxu0 %v254_v0 }
  0x20   :  { %167 = vmatpush3.msra.mxu0 %v43_v3  ;;  %p231_p13 = por %p230_p12, %p229_p11 }
  0x21   :  { %168 = vmatprep.subr.mxu0 %v254_v0 }
  0x22   :  { %169 = vmatpush3.msra.mxu0 %v42_v4  ;;  %p232_p0 = pnand %p231_p13, %p225_p10 }
  0x23   :  { %171 = vmatmul.mubr.msk.f32.vlgmr.msra.gmra.mxu0 %vm53_vm1, %v41_v5 }
  0xe3   :  { %v123_v7 = vpop.f32.mrf.mxu0 }
  0xe4   :  { %v124_v8 = vadd.f32 %v155_v6, %v123_v7 }
  0xe5   :  { %v172_v9 = vpop.f32.mrf.mxu0 }
  0xe6   :  { %127 = vmax.xlane.f32.xlu0 %v124_v8 }
 0x16f   :  { %v128_v10 = vpop.xlane.xlu0 %127 }
 0x170   :  { %v129_v11 = vsub.f32 %v124_v8, %v128_v10 }
 0x172   :  { %v130_v12 = vmul.f32 1.442695, %v129_v11 }
 0x174   :  { %180 = vpow2.f32 %v130_v12 }
 0x181   :  { %v181_v13 = vpop.eup %180 }
 0x182   :  { %132 = vadd.xlane.f32.xlu0 %v181_v13 }
 0x20b   :  { %v133_v14 = vpop.xlane.xlu0 %132 }
 0x20c   :  { %182 = vlog2.f32 %v133_v14 }
 0x219   :  { %v183_v15 = vpop.eup %182 }
 0x21a   :  { %v135_v16 = vmul.f32 0.6931472, %v183_v15 }
 0x21c   :  { %v136_v17 = vsub.f32 %v129_v11, %v135_v16 }
 0x21e   :  { %138 = vst.msk [vmem:[#allocation7] sm:$0xff] %vm137_vm2, %v136_v17 }
 0x21f   :  { %235 = shalt.err (!%p232_p0)
}
 0x220   :  { %148 = dma.vmem_to_hbm [thread:$0]  %s146_s25, 128, %s292_s3, [#allocation4]  }
 0x221   :  { %248 = dma.done.wait [#allocation4], 128  }
 0x222   :  { %249 = vsyncadd [#allocation4], 4294967168 }
 0x223   :  { %152 = vsyncpa [#allocation3], 1 }
 0x224   :  { %153 = vsyncpa [#allocation6], 1 }
 0x225   :  { %154 = vsyncpa [#allocation4], 1 }

</bundles_post_ra>
